<compile_context>
chip_gen: v6e
topology: v6e:2x2x1
jax: 0.10.0
libtpu: 0.0.40
codegen_flags: <defaults>
</compile_context>

<pallas_src>
import jax
import jax.numpy as jnp
from jax import lax
from jax.experimental import pallas as pl
from jax.experimental.pallas import tpu as pltpu


def _round_up(x, m):
    return ((x + m - 1) // m) * m


def _cdiv(a, b):
    return (a + b - 1) // b


def _conv_stats_kernel(p_ref, w_ref, stats_ref):
    """Per-block conv + BN partial statistics.

    p_ref:     (tm, K)     im2col patch rows (K = kh*kw*Cin)
    w_ref:     (K, Cout)   reshaped conv weight
    stats_ref: (2, Cout)   row 0 = sum(y) over these tm rows, row 1 = sum(y*y)
    """
    acc = jnp.dot(p_ref[...], w_ref[...], preferred_element_type=jnp.float32)
    stats_ref[0:1, :] = jnp.sum(acc, axis=0, keepdims=True)
    stats_ref[1:2, :] = jnp.sum(acc * acc, axis=0, keepdims=True)


def _conv_bn_apply_kernel(p_ref, w_ref, scale_ref, shift_ref, o_ref):
    """Recompute the conv for this block and apply the folded BN affine."""
    acc = jnp.dot(p_ref[...], w_ref[...], preferred_element_type=jnp.float32)
    o_ref[...] = (acc * scale_ref[...] + shift_ref[...]).astype(o_ref.dtype)


def _pick_row_tile(M, K, Cout, bpe, budget_bytes):
    """Rows per grid step, with lane/sublane-padding-aware VMEM accounting."""
    k_lanes = _round_up(K, 128)
    c_lanes = _round_up(Cout, 128)
    # Resident per step (kernel 2 is the larger of the two kernels):
    #   2x double-buffered patch block, f32 accumulator temp,
    #   2x double-buffered f32 output block.
    row_bytes = 2 * k_lanes * bpe + c_lanes * 4 + 2 * c_lanes * 4
    fixed = (2 * _round_up(K, 8) * c_lanes * bpe        # weights (2-buffered)
             + 4 * 8 * c_lanes * 4                      # scale/shift blocks
             + (1 << 20))                               # misc compiler scratch
    # TODO(synk): if K is so large that even an 8-row tile exceeds the budget,
    # a K-dim grid axis (accumulator pattern) would be needed.
    avail = max(budget_bytes - fixed, 8 * row_bytes)
    tm = max(8, min(4096, (avail // row_bytes) // 8 * 8))
    tm = min(tm, _round_up(M, 8))
    # Guarantee >= 2 grid steps when M allows it (v7x megacore + pipelining).
    if M >= 16:
        tm = min(tm, _round_up(_cdiv(M, 2), 8))
    return tm


def conv_bn_forward(x_nchw, weight_oihw, gamma, beta, *, stride=1, eps=1e-5,
                    compute_dtype=jnp.float32):
    N, Cin, H, W = x_nchw.shape
    Cout, _, kh, kw = weight_oihw.shape
    pad = kh // 2
    Hp, Wp = H + 2 * pad, W + 2 * pad
    Ho = (Hp - kh) // stride + 1
    Wo = (Wp - kw) // stride + 1
    M = N * Ho * Wo
    K = kh * kw * Cin

    # ---- XLA-side prep (small, one pass): layout + im2col + weight reshape.
    # TODO(synk): for large Cin (K >~ 512) keep the input NHWC and do the
    # kh*kw shifted slices in VMEM instead, to avoid the kh*kw x input blow-up.
    x = jnp.transpose(x_nchw, (0, 2, 3, 1)).astype(compute_dtype)     # NHWC
    xp = jnp.pad(x, ((0, 0), (pad, pad), (pad, pad), (0, 0)))
    taps = []
    for dh in range(kh):
        for dw in range(kw):
            taps.append(xp[:, dh:dh + stride * Ho:stride,
                           dw:dw + stride * Wo:stride, :])
    patches = jnp.concatenate(taps, axis=-1).reshape(M, K)

    # OIHW -> (kh, kw, Cin, Cout) -> (K, Cout); K ordering matches `patches`.
    w = jnp.transpose(weight_oihw, (2, 3, 1, 0)).reshape(K, Cout)
    w = w.astype(compute_dtype)

    # ---- Per-generation VMEM budget (explicit, padding-aware). -------------
    try:
        vmem_cap = int(pltpu.get_tpu_info().vmem_capacity_bytes)
    except Exception:
        vmem_cap = 64 << 20            # conservative (v7x-class) fallback
    vmem_limit = min(vmem_cap * 3 // 4, 96 << 20)
    bpe = jnp.dtype(compute_dtype).itemsize
    tm = _pick_row_tile(M, K, Cout, bpe, vmem_limit - (4 << 20))
    Mp = _round_up(M, tm)
    G = Mp // tm
    if Mp != M:
        # Zero rows contribute exactly 0 to sum / sum-of-squares and are
        # sliced off the output, so padding is semantics-free.
        patches = jnp.pad(patches, ((0, Mp - M), (0, 0)))

    cparams = pltpu.CompilerParams(dimension_semantics=("parallel",),
                                   vmem_limit_bytes=vmem_limit)

    # ---- Kernel 1: conv + per-block BN partial sums (no y intermediate). ---
    stats = pl.pallas_call(
        _conv_stats_kernel,
        out_shape=jax.ShapeDtypeStruct((G, 2, Cout), jnp.float32),
        grid_spec=pltpu.PrefetchScalarGridSpec(
            num_scalar_prefetch=0,
            grid=(G,),
            in_specs=[
                pl.BlockSpec((tm, K), lambda i: (i, 0)),
                pl.BlockSpec((K, Cout), lambda i: (0, 0)),
            ],
            out_specs=pl.BlockSpec((None, 2, Cout), lambda i: (i, 0, 0)),
        ),
        compiler_params=cparams,
    )(patches, w)

    # Tiny reduction over the per-block partials; fold BN into scale/shift.
    ch_sum = jnp.sum(stats[:, 0, :], axis=0)          # (Cout,)
    ch_ssq = jnp.sum(stats[:, 1, :], axis=0)          # (Cout,)
    mean = ch_sum / M
    var = jnp.maximum(ch_ssq / M - mean * mean, 0.0)  # biased var (PyTorch BN)
    # TODO(synk): E[y^2]-mean^2 can cancel for very large M / large activation
    # means; a centered second pass would be more robust for such workloads.
    inv = lax.rsqrt(var + eps)
    g32 = gamma.astype(jnp.float32)
    scale = (g32 * inv).reshape(1, Cout)
    shift = (beta.astype(jnp.float32) - mean * g32 * inv).reshape(1, Cout)

    # ---- Kernel 2: recompute conv + apply BN, output at native Cout width. -
    out_flat = pl.pallas_call(
        _conv_bn_apply_kernel,
        out_shape=jax.ShapeDtypeStruct((Mp, Cout), jnp.float32),
        grid_spec=pltpu.PrefetchScalarGridSpec(
            num_scalar_prefetch=0,
            grid=(G,),
            in_specs=[
                pl.BlockSpec((tm, K), lambda i: (i, 0)),
                pl.BlockSpec((K, Cout), lambda i: (0, 0)),
                pl.BlockSpec((1, Cout), lambda i: (0, 0)),
                pl.BlockSpec((1, Cout), lambda i: (0, 0)),
            ],
            out_specs=pl.BlockSpec((tm, Cout), lambda i: (i, 0)),
        ),
        compiler_params=cparams,
    )(patches, w, scale, shift)

    # TODO(synk): the final NHWC->NCHW transpose stays in XLA; it touches only
    # Cout-wide (minimal) data, but could be folded into the apply kernel's
    # output layout if this pass ever shows up in profiles.
    out = out_flat[:M].reshape(N, Ho, Wo, Cout)
    return jnp.transpose(out, (0, 3, 1, 2))            # back to NCHW


def reference_conv_bn(x_nchw, weight_oihw, gamma, beta, *, stride=1, eps=1e-5):
    """Pure-JAX reference matching PyTorch Conv2d + training-mode BatchNorm2d."""
    pad = weight_oihw.shape[2] // 2
    x = jnp.transpose(x_nchw, (0, 2, 3, 1)).astype(jnp.float32)
    w = jnp.transpose(weight_oihw, (2, 3, 1, 0)).astype(jnp.float32)
    y = lax.conv_general_dilated(
        x, w, window_strides=(stride, stride),
        padding=((pad, pad), (pad, pad)),
        dimension_numbers=("NHWC", "HWIO", "NHWC"))
    mean = jnp.mean(y, axis=(0, 1, 2))
    var = jnp.mean((y - mean) ** 2, axis=(0, 1, 2))
    out = (y - mean) / jnp.sqrt(var + eps) * gamma + beta
    return jnp.transpose(out, (0, 3, 1, 2))


if __name__ == "__main__":
    # ConvBN(in_planes=4, out_planes=8, kernel=3, stride=1)
    N, Cin, H, W = 2, 4, 16, 16
    Cout, k, stride = 8, 3, 1

    key = jax.random.PRNGKey(0)
    k_x, k_w, k_g, k_b = jax.random.split(key, 4)

    x = jax.random.normal(k_x, (N, Cin, H, W), dtype=jnp.float32)
    conv_weight = 0.1 * jax.random.normal(k_w, (Cout, Cin, k, k),
                                          dtype=jnp.float32)  # Conv2d.weight (OIHW)
    bn_gamma = 1.0 + 0.1 * jax.random.normal(k_g, (Cout,), dtype=jnp.float32)
    bn_beta = 0.1 * jax.random.normal(k_b, (Cout,), dtype=jnp.float32)

    out = conv_bn_forward(x, conv_weight, bn_gamma, bn_beta, stride=stride)
    out = jax.block_until_ready(out)

    ref = reference_conv_bn(x, conv_weight, bn_gamma, bn_beta, stride=stride)
    assert out.shape == (N, Cout, H, W), out.shape
    assert jnp.allclose(out, ref, rtol=1e-4, atol=1e-4), (
        float(jnp.max(jnp.abs(out - ref))))

    print("KERNEL_OK")
</pallas_src>

<mosaic_0001>
module attributes {stable_mosaic.version = 11 : i64} {
  func.func @_conv_stats_kernel(%arg0: i32, %arg1: memref<256x36xf32, #tpu.memory_space<vmem>>, %arg2: memref<36x8xf32, #tpu.memory_space<vmem>>, %arg3: memref<1x2x8xf32, #tpu.memory_space<vmem>>) attributes {dimension_semantics = [#tpu.dimension_semantics<parallel>], iteration_bounds = array<i64: 2>, scalar_prefetch = 0 : i64, scratch_operands = 0 : i64, tpu.core_type = #tpu.core_type<tc>, window_params = [{transform_indices = @transform_0, window_bounds = array<i64: 256, 36>}, {pipeline_mode = #tpu.pipeline_mode<synchronous>, transform_indices = @transform_1, window_bounds = array<i64: 36, 8>}, {transform_indices = @transform_2, window_bounds = array<i64: 1, 2, 8>}]} {
    %c0 = arith.constant 0 : index
    %c0_0 = arith.constant 0 : index
    %0 = vector.load %arg1[%c0, %c0_0] : memref<256x36xf32, #tpu.memory_space<vmem>>, vector<256x36xf32>
    %c0_1 = arith.constant 0 : index
    %c0_2 = arith.constant 0 : index
    %1 = vector.load %arg2[%c0_1, %c0_2] : memref<36x8xf32, #tpu.memory_space<vmem>>, vector<36x8xf32>
    %cst = arith.constant dense<0.000000e+00> : vector<256x8xf32>
    %2 = tpu.matmul %0, %1, %cst {dimension_numbers = #tpu.dot_dimension_numbers<[1], [0], [0], [1], [0, 0, 1, 1], [], []>} : vector<256x36xf32>, vector<36x8xf32>, vector<256x8xf32> -> vector<256x8xf32>
    %cst_3 = arith.constant dense<0.000000e+00> : vector<8xf32>
    %3 = vector.multi_reduction <add>, %2, %cst_3 [0] : vector<256x8xf32> to vector<8xf32>
    %4 = vector.shape_cast %3 : vector<8xf32> to vector<1x8xf32>
    %c0_4 = arith.constant 0 : index
    %c0_5 = arith.constant 0 : index
    %c0_6 = arith.constant 0 : index
    %5 = vector.load %arg3[%c0_4, %c0_5, %c0_6] : memref<1x2x8xf32, #tpu.memory_space<vmem>>, vector<1x1x8xf32>
    %6 = vector.shape_cast %5 : vector<1x1x8xf32> to vector<1x8xf32>
    %7 = vector.shape_cast %4 : vector<1x8xf32> to vector<1x1x8xf32>
    tpu.vector_store %arg3[%c0_4, %c0_5, %c0_6], %7 {strides = array<i32>} : memref<1x2x8xf32, #tpu.memory_space<vmem>>, vector<1x1x8xf32>,
    %8 = arith.mulf %2, %2 : vector<256x8xf32>
    %cst_7 = arith.constant dense<0.000000e+00> : vector<8xf32>
    %9 = vector.multi_reduction <add>, %8, %cst_7 [0] : vector<256x8xf32> to vector<8xf32>
    %10 = vector.shape_cast %9 : vector<8xf32> to vector<1x8xf32>
    %c0_8 = arith.constant 0 : index
    %c1 = arith.constant 1 : index
    %c0_9 = arith.constant 0 : index
    %11 = vector.load %arg3[%c0_8, %c1, %c0_9] : memref<1x2x8xf32, #tpu.memory_space<vmem>>, vector<1x1x8xf32>
    %12 = vector.shape_cast %11 : vector<1x1x8xf32> to vector<1x8xf32>
    %13 = vector.shape_cast %10 : vector<1x8xf32> to vector<1x1x8xf32>
    tpu.vector_store %arg3[%c0_8, %c1, %c0_9], %13 {strides = array<i32>} : memref<1x2x8xf32, #tpu.memory_space<vmem>>, vector<1x1x8xf32>,
    return
  }
  func.func @transform_0(%arg0: i32) -> (i32, i32) {
    %c0_i32 = arith.constant 0 : i32
    %c0_i32_0 = arith.constant 0 : i32
    return %arg0, %c0_i32 : i32, i32
  }
  func.func @transform_1(%arg0: i32) -> (i32, i32) {
    %c0_i32 = arith.constant 0 : i32
    %c0_i32_0 = arith.constant 0 : i32
    %c0_i32_1 = arith.constant 0 : i32
    return %c0_i32, %c0_i32_0 : i32, i32
  }
  func.func @transform_2(%arg0: i32) -> (i32, i32, i32) {
    %c0_i32 = arith.constant 0 : i32
    %c0_i32_0 = arith.constant 0 : i32
    %c0_i32_1 = arith.constant 0 : i32
    return %arg0, %c0_i32, %c0_i32_0 : i32, i32, i32
  }
}

</mosaic_0001>

<bundles_post_ra>
// kernel: tpu_custom_call.1
= control target key start
LH: loop header
LB: loop body
LE: loop exit
PB: predicated region body
PF: predicated region fallthrough
CT: control target
= control target key end

     0   :  { %7 = vsyncpa [#allocation3], 0  ;;  %s1286_s0 = inlined_call_operand.vmem [shape: f32[512,36], index: 0, kind: input, shape index: {}]   ;;  %s1287_s1 = inlined_call_operand.vmem [shape: f32[36,8], index: 1, kind: input, shape index: {}]   ;;  %s1288_s2 = inlined_call_operand.hbm [shape: f32[2,2,8], index: 2, kind: output, shape index: {}]  }
   0x1   :  { %9 = vsyncpa [#allocation3 + $0x1], 0  ;;  %s1020_s9 = smov 0   ;;  %s1022_s10 = smov 0  }
   0x2   :  { %s1024_s11 = smov 0   ;;  %s1026_s12 = smov 0  }
   0x3 LB: > { %s753_s13 = sadd.s32 4294967295, %s1002_s12   ;;  %s754_s14 = sadd.s32 4294967294, %s1002_s12   ;;  %s1002_s12 = sphi %s1026_s12, %s1294_s12   ;;  %s998_s11 = sphi %s1024_s11, %s1293_s11   ;;  %s994_s10 = sphi %s1022_s10, %s1292_s10   ;;  %s990_s9 = sphi %s1020_s9, %s1291_s9  }
   0x4   : > { %s1043_s15 = sadd.s32 1, %s1002_s12   ;;  %s69_s16 = sadd.s32 1, %s998_s11 }
   0x5   : > { %s66_s17 = ssub.s32 %s1002_s12, %s1043_s15  ;;  %p79_p0 = scmp.ne.s32.totalorder %s998_s11, %s994_s10 }
   0x6   : > { %p67_p1 = scmp.eq.s32.totalorder %s66_s17, 0  ;;  %p80_p2 = scmp.eq.s32.totalorder %s753_s13, 1 }
   0x7   : > { %p85_p3 = scmp.ne.s32.totalorder %s994_s10, %s990_s9  ;;  %p86_p4 = scmp.eq.s32.totalorder %s754_s14, 1 }
   0x8   : > { %s1053_s18 = scalar_select %p67_p1, %s998_s11, %s69_s16  }
   0x9   : > { %p1055_p5 = por %p80_p2, %p79_p0  ;;  %p1059_p6 = por %p86_p4, %p85_p3 }
   0xa   : > { %p757_p7 = scmp.ge.s32.totalorder %s1002_s12, 1  ;;  %p116_p8 = scmp.lt.s32.totalorder %s1002_s12, 3 }
   0xc   : > { %p117_p9 = pnand %p757_p7, %p116_p8 }
   0xd   : > { %s1071_s25 = sshll.u32 (!%p117_p9), %s753_s13, 5  ;;  %s135_s13 = sand.u32 (!%p117_p9), 1, %s994_s10  }
   0xe   : > { %120 = sbr.rel (%p117_p9) target bundleno = 317 (0x13d), region = 28  ;;  %p139_p10 = scmp.lt.s32.totalorder (!%p117_p9), %s1071_s25, 63 }
   0xf   : > { %s758_s14 = sshll.u32 (!%p117_p9), %s135_s13, 1  ;;  %s693_s23 = scalar_lea.hbm (!%p117_p9), %s1288_s2, %s1071_s25 }
  0x10   : > { %s137_s16 = scalar_lea.vmem (!%p117_p9), [#allocation2], %s758_s14  ;;  %s682_s24 = scalar_lea.sflag (!%p117_p9), [#allocation3], %s135_s13 }
  0x11   : > { %s695_s17 = sshll.u32 (!%p117_p9), %s137_s16, 4  ;;  %s1004_s27 = smov (!%p117_p9), [#allocation2]   ;;  %s696_s17 = int_to_ptr.vmem [resolvable:$true] %s695_s17 }
  0x12   : > { %s942_s26 = scalar_lea.vmem (!%p117_p9), %s696_s17, 32 }
  0x13   : > { %v180_v0 = vld [vmem:[%s1287_s1 + $0x20] sm:$0xf]  ;;  %vm278_vm0 = vcmask 1043456   ;;  %v179_v1 = vld [vmem:[%s1287_s1 + $0x18] sm:$0xff]  ;;  %v178_v2 = vld [vmem:[%s1287_s1 + $0x10] sm:$0xff]  ;;  %s140_s28 = scalar_select %p139_p10, %s1071_s25, 63 }
  0x14   : > { %835 = vmatprep.subr.msk.mxu0 %vm278_vm0, %v180_v0  ;;  %893 = vmatprep.subr.msk.mxu1 %vm278_vm0, %v180_v0  ;;  %v177_v3 = vld [vmem:[%s1287_s1 + $0x8] sm:$0xff]  ;;  %vm181_vm1 = vcmask 293888   ;;  %v176_v4 = vld [vmem:[%s1287_s1] sm:$0xff]  ;;  %vm507_vm2 = vcmask 64512   ;;  %vm577_vm3 = vcmask 57344   ;;  %p943_p11 = scmp.ne.s32.totalorder %s696_s17, %s942_s26 }
  0x15   : > { %836 = vmatpush3.msk.msra.mxu0 %vm278_vm0, %v180_v0  ;;  %898 = vmatpush3.msk.msra.mxu1 %vm278_vm0, %v180_v0  ;;  %s760_s3 = sshll.u32 %s140_s28, 3  ;;  %s946_s28 = sshll.u32 %s1004_s27, 4  ;;  %s947_s28 = int_to_ptr.vmem [resolvable:$false] %s946_s28 }
  0x16   : > { %837 = vmatprep.subr.mxu0 %v179_v1  ;;  %894 = vmatprep.subr.mxu1 %v179_v1  ;;  %s1087_s8 = scalar_lea.vmem %s1286_s0, %s760_s3  ;;  %p944_p12 = pnand %p943_p11, %p1055_p5 }
  0x17   : > { %838 = vmatpush3.msra.mxu0 %v179_v1  ;;  %899 = vmatpush3.msra.mxu1 %v179_v1  ;;  %v144_v5 = vld [vmem:[%s1087_s8] sm:$0xff]  ;;  %v145_v6 = vld [vmem:[%s1087_s8 + $0x8] sm:$0xff]  ;;  %v146_v7 = vld [vmem:[%s1087_s8 + $0x10] sm:$0xff]  ;;  %s948_s29 = scalar_lea.vmem %s947_s28, 64  ;;  %p949_p0 = scmp.lt.s32.totalorder %s696_s17, %s947_s28 }
  0x18   : > { %839 = vmatprep.subr.mxu0 %v178_v2  ;;  %895 = vmatprep.subr.mxu1 %v178_v2  ;;  %v147_v8 = vld [vmem:[%s1087_s8 + $0x18] sm:$0xff]  ;;  %v160_v9 = vld [vmem:[%s1087_s8 + $0x80] sm:$0xff]  ;;  %v161_v10 = vld [vmem:[%s1087_s8 + $0x88] sm:$0xff]  ;;  %p945_p13 = pneg %p944_p12  ;;  %p950_p1 = scmp.lt.s32.totalorder %s948_s29, %s942_s26 }
  0x19   : > { %840 = vmatpush3.msra.mxu0 %v178_v2  ;;  %900 = vmatpush3.msra.mxu1 %v178_v2  ;;  %v148_v11 = vld [vmem:[%s1087_s8 + $0x20] sm:$0xff]  ;;  %v162_v12 = vld [vmem:[%s1087_s8 + $0x90] sm:$0xff]  ;;  %v163_v13 = vld [vmem:[%s1087_s8 + $0x98] sm:$0xff] }
  0x1a   : > { %841 = vmatprep.subr.mxu0 %v177_v3  ;;  %896 = vmatprep.subr.mxu1 %v177_v3  ;;  %v149_v14 = vld [vmem:[%s1087_s8 + $0x28] sm:$0xff]  ;;  %v164_v15 = vld [vmem:[%s1087_s8 + $0xa0] sm:$0xff]  ;;  %v150_v16 = vld [vmem:[%s1087_s8 + $0x30] sm:$0xff]  ;;  %p951_p2 = por %p950_p1, %p949_p0 }
  0x1b   : > { %842 = vmatpush3.msra.mxu0 %v177_v3  ;;  %845 = vmatprep.mubr.msk.f32.mxu0 %vm181_vm1, %v144_v5  ;;  %v165_v17 = vld [vmem:[%s1087_s8 + $0xa8] sm:$0xff]  ;;  %v151_v18 = vld [vmem:[%s1087_s8 + $0x38] sm:$0xff]  ;;  %v166_v19 = vld [vmem:[%s1087_s8 + $0xb0] sm:$0xff] }
  0x1c   : > { %843 = vmatprep.subr.mxu0 %v176_v4  ;;  %901 = vmatpush3.msra.mxu1 %v177_v3  ;;  %v152_v20 = vld [vmem:[%s1087_s8 + $0x40] sm:$0xff]  ;;  %v167_v21 = vld [vmem:[%s1087_s8 + $0xb8] sm:$0xff]  ;;  %v153_v22 = vld [vmem:[%s1087_s8 + $0x48] sm:$0xff]  ;;  %p952_p3 = pnand %p951_p2, %p945_p13 }
  0x1d   : > { %844 = vmatpush3.msra.mxu0 %v176_v4  ;;  %897 = vmatprep.subr.mxu1 %v176_v4  ;;  %v168_v23 = vld [vmem:[%s1087_s8 + $0xc0] sm:$0xff]  ;;  %v154_v24 = vld [vmem:[%s1087_s8 + $0x50] sm:$0xff]  ;;  %v169_v25 = vld [vmem:[%s1087_s8 + $0xc8] sm:$0xff] }
  0x1e   : > { %846 = vmatmul.mubr.msk.f32.vlgmr.msra.gmra.mxu0 %vm181_vm1, %v145_v6  ;;  %902 = vmatpush3.msra.mxu1 %v176_v4  ;;  %v155_v26 = vld [vmem:[%s1087_s8 + $0x58] sm:$0xff]  ;;  %v170_v27 = vld [vmem:[%s1087_s8 + $0xd0] sm:$0xff]  ;;  %v156_v28 = vld [vmem:[%s1087_s8 + $0x60] sm:$0xff] }
  0x1f   : > { %848 = vmatprep.mubr.msk.f32.mxu0 %vm181_vm1, %v146_v7  ;;  %869 = vmatprep.mubr.msk.f32.mxu1 %vm181_vm1, %v160_v9  ;;  %v171_v29 = vld [vmem:[%s1087_s8 + $0xd8] sm:$0xff]  ;;  %v157_v30 = vld [vmem:[%s1087_s8 + $0x68] sm:$0xff]  ;;  %v172_v31 = vld [vmem:[%s1087_s8 + $0xe0] sm:$0xff] }
  0x20   : > { %870 = vmatmul.mubr.msk.f32.vlgmr.msra.gmra.mxu1 %vm181_vm1, %v161_v10  ;;  %v158_v32 = vld [vmem:[%s1087_s8 + $0x70] sm:$0xff]  ;;  %v173_v33 = vld [vmem:[%s1087_s8 + $0xe8] sm:$0xff]  ;;  %v159_v34 = vld [vmem:[%s1087_s8 + $0x78] sm:$0xff] }
  0x21   : > { %872 = vmatprep.mubr.msk.f32.mxu1 %vm181_vm1, %v162_v12  ;;  %v174_v35 = vld [vmem:[%s1087_s8 + $0xf0] sm:$0xff]  ;;  %v175_v36 = vld [vmem:[%s1087_s8 + $0xf8] sm:$0xff] }
  0x22   : > { %849 = vmatmul.mubr.msk.f32.gmra.mxu0 %vm181_vm1, %v147_v8 }
  0x23   : > { %851 = vmatprep.mubr.msk.f32.mxu0 %vm181_vm1, %v148_v11 }
  0x24   : > { %873 = vmatmul.mubr.msk.f32.gmra.mxu1 %vm181_vm1, %v163_v13 }
  0x25   : > { %875 = vmatprep.mubr.msk.f32.mxu1 %vm181_vm1, %v164_v15 }
  0x26   : > { %852 = vmatmul.mubr.msk.f32.gmra.mxu0 %vm181_vm1, %v149_v14 }
  0x27   : > { %854 = vmatprep.mubr.msk.f32.mxu0 %vm181_vm1, %v150_v16 }
  0x28   : > { %876 = vmatmul.mubr.msk.f32.gmra.mxu1 %vm181_vm1, %v165_v17 }
  0x29   : > { %878 = vmatprep.mubr.msk.f32.mxu1 %vm181_vm1, %v166_v19 }
  0x2a   : > { %855 = vmatmul.mubr.msk.f32.gmra.mxu0 %vm181_vm1, %v151_v18 }
  0x2b   : > { %857 = vmatprep.mubr.msk.f32.mxu0 %vm181_vm1, %v152_v20 }
  0x2c   : > { %879 = vmatmul.mubr.msk.f32.gmra.mxu1 %vm181_vm1, %v167_v21 }
  0x2d   : > { %881 = vmatprep.mubr.msk.f32.mxu1 %vm181_vm1, %v168_v23 }
  0x2e   : > { %858 = vmatmul.mubr.msk.f32.gmra.mxu0 %vm181_vm1, %v153_v22 }
  0x2f   : > { %860 = vmatprep.mubr.msk.f32.mxu0 %vm181_vm1, %v154_v24 }
  0x30   : > { %882 = vmatmul.mubr.msk.f32.gmra.mxu1 %vm181_vm1, %v169_v25 }
  0x31   : > { %884 = vmatprep.mubr.msk.f32.mxu1 %vm181_vm1, %v170_v27 }
  0x32   : > { %861 = vmatmul.mubr.msk.f32.gmra.mxu0 %vm181_vm1, %v155_v26 }
  0x33   : > { %863 = vmatprep.mubr.msk.f32.mxu0 %vm181_vm1, %v156_v28 }
  0x34   : > { %885 = vmatmul.mubr.msk.f32.gmra.mxu1 %vm181_vm1, %v171_v29 }
  0x35   : > { %887 = vmatprep.mubr.msk.f32.mxu1 %vm181_vm1, %v172_v31 }
  0x36   : > { %864 = vmatmul.mubr.msk.f32.gmra.mxu0 %vm181_vm1, %v157_v30 }
  0x37   : > { %866 = vmatprep.mubr.msk.f32.mxu0 %vm181_vm1, %v158_v32 }
  0x38   : > { %888 = vmatmul.mubr.msk.f32.gmra.mxu1 %vm181_vm1, %v173_v33 }
  0x39   : > { %890 = vmatprep.mubr.msk.f32.mxu1 %vm181_vm1, %v174_v35 }
  0x3a   : > { %867 = vmatmul.mubr.msk.f32.gmra.mxu0 %vm181_vm1, %v159_v34 }
  0x3c   : > { %891 = vmatmul.mubr.msk.f32.gmra.mxu1 %vm181_vm1, %v175_v36 }
  0xde   : > { %v847_v37 = vpop.f32.mrf.mxu0 }
  0xdf   : > { %v580_v39 = vmul.f32 %v847_v37, %v847_v37  ;;  %v509_v44 = vsel %vm507_vm2, %v847_v37, 0.0 }
  0xe0   : > { %v348_v38 = vpop.f32.mrf.mxu0  ;;  %v1154_v42 = vpop.f32.mrf.mxu1 }
  0xe1   : > { %v508_v40 = vsel %vm507_vm2, %v348_v38, 0.0  ;;  %v579_v41 = vmul.f32 %v348_v38, %v348_v38  ;;  %v612_v49 = vsel %vm507_vm2, %v580_v39, 0.0 }
  0xe2   : > { %v850_v43 = vpop.f32.mrf.mxu0  ;;  %v1158_v46 = vpop.f32.mrf.mxu1  ;;  %v510_v47 = vadd.f32 %v509_v44, %v508_v40 }
  0xe3   : > { %v611_v45 = vsel %vm507_vm2, %v579_v41, 0.0  ;;  %v582_v50 = vmul.f32 %v850_v43, %v850_v43  ;;  %v513_v57 = vsel %vm507_vm2, %v850_v43, 0.0 }
  0xe4   : > { %v358_v48 = vpop.f32.mrf.mxu0  ;;  %v1162_v53 = vpop.f32.mrf.mxu1  ;;  %v613_v54 = vadd.f32 %v612_v49, %v611_v45 }
  0xe5   : > { %v511_v51 = vsel %vm507_vm2, %v358_v48, 0.0  ;;  %v581_v52 = vmul.f32 %v358_v48, %v358_v48  ;;  %v616_v63 = vsel %vm507_vm2, %v582_v50, 0.0 }
  0xe6   : > { %v512_v55 = vadd.f32 %v511_v51, %v510_v47  ;;  %v853_v56 = vpop.f32.mrf.mxu0  ;;  %v1166_v62 = vpop.f32.mrf.mxu1 }
  0xe7   : > { %v614_v58 = vsel %vm507_vm2, %v581_v52, 0.0  ;;  %v584_v0 = vmul.f32 %v853_v56, %v853_v56  ;;  %v517_v6 = vsel %vm507_vm2, %v853_v56, 0.0 }
  0xe8   : > { %v615_v59 = vadd.f32 %v614_v58, %v613_v54  ;;  %v368_v60 = vpop.f32.mrf.mxu0  ;;  %v514_v61 = vadd.f32 %v513_v57, %v512_v55  ;;  %v1172_v11 = vpop.f32.mrf.mxu1 }
  0xe9   : > { %v515_v1 = vsel %vm507_vm2, %v368_v60, 0.0  ;;  %v583_v2 = vmul.f32 %v368_v60, %v368_v60  ;;  %v620_v12 = vsel %vm507_vm2, %v584_v0, 0.0 }
  0xea   : > { %v516_v3 = vadd.f32 %v515_v1, %v514_v61  ;;  %v617_v4 = vadd.f32 %v616_v63, %v615_v59  ;;  %v856_v5 = vpop.f32.mrf.mxu0  ;;  %v1178_v24 = vpop.f32.mrf.mxu1 }
  0xeb   : > { %v618_v7 = vsel %vm507_vm2, %v583_v2, 0.0  ;;  %v586_v13 = vmul.f32 %v856_v5, %v856_v5  ;;  %v521_v19 = vsel %vm507_vm2, %v856_v5, 0.0 }
  0xec   : > { %v619_v8 = vadd.f32 %v618_v7, %v617_v4  ;;  %v378_v9 = vpop.f32.mrf.mxu0  ;;  %v518_v10 = vadd.f32 %v517_v6, %v516_v3  ;;  %v1184_v37 = vpop.f32.mrf.mxu1 }
  0xed   : > { %v519_v14 = vsel %vm507_vm2, %v378_v9, 0.0  ;;  %v585_v15 = vmul.f32 %v378_v9, %v378_v9  ;;  %v624_v25 = vsel %vm507_vm2, %v586_v13, 0.0  ;;  %v595_v13 = vmul.f32 %v1158_v46, %v1158_v46 }
  0xee   : > { %v520_v16 = vadd.f32 %v519_v14, %v518_v10  ;;  %v621_v17 = vadd.f32 %v620_v12, %v619_v8  ;;  %v859_v18 = vpop.f32.mrf.mxu0  ;;  %v458_v52 = vpop.f32.mrf.mxu1 }
  0xef   : > { %v622_v20 = vsel %vm507_vm2, %v585_v15, 0.0  ;;  %v588_v26 = vmul.f32 %v859_v18, %v859_v18  ;;  %v525_v32 = vsel %vm507_vm2, %v859_v18, 0.0  ;;  %v596_v18 = vmul.f32 %v1154_v42, %v1154_v42 }
  0xf0   : > { %v623_v21 = vadd.f32 %v622_v20, %v621_v17  ;;  %v388_v22 = vpop.f32.mrf.mxu0  ;;  %v522_v23 = vadd.f32 %v521_v19, %v520_v16  ;;  %v883_v3 = vpop.f32.mrf.mxu1  ;;  %v539_v19 = vsel %vm507_vm2, %v1158_v46, 0.0  ;;  %v543_v46 = vsel %vm507_vm2, %v1166_v62, 0.0 }
  0xf1   : > { %v523_v27 = vsel %vm507_vm2, %v388_v22, 0.0  ;;  %v587_v28 = vmul.f32 %v388_v22, %v388_v22  ;;  %v628_v38 = vsel %vm507_vm2, %v588_v26, 0.0  ;;  %v541_v22 = vsel %vm507_vm2, %v1154_v42, 0.0 }
  0xf2   : > { %v524_v29 = vadd.f32 %v523_v27, %v522_v23  ;;  %v625_v30 = vadd.f32 %v624_v25, %v623_v21  ;;  %v862_v31 = vpop.f32.mrf.mxu0  ;;  %v468_v16 = vpop.f32.mrf.mxu1  ;;  %v642_v23 = vsel %vm507_vm2, %v595_v13, 0.0  ;;  %v597_v25 = vmul.f32 %v1166_v62, %v1166_v62 }
  0xf3   : > { %v626_v33 = vsel %vm507_vm2, %v587_v28, 0.0  ;;  %v590_v39 = vmul.f32 %v862_v31, %v862_v31  ;;  %v529_v47 = vsel %vm507_vm2, %v862_v31, 0.0  ;;  %v545_v42 = vsel %vm507_vm2, %v1162_v53, 0.0 }
  0xf4   : > { %v627_v34 = vadd.f32 %v626_v33, %v625_v30  ;;  %v398_v35 = vpop.f32.mrf.mxu0  ;;  %v526_v36 = vadd.f32 %v525_v32, %v524_v29  ;;  %v886_v28 = vpop.f32.mrf.mxu1  ;;  %v644_v29 = vsel %vm507_vm2, %v596_v18, 0.0  ;;  %v598_v30 = vmul.f32 %v1162_v53, %v1162_v53 }
  0xf5   : > { %v527_v40 = vsel %vm507_vm2, %v398_v35, 0.0  ;;  %v589_v41 = vmul.f32 %v398_v35, %v398_v35  ;;  %v632_v54 = vsel %vm507_vm2, %v590_v39, 0.0  ;;  %v646_v33 = vsel %vm507_vm2, %v597_v25, 0.0 }
  0xf6   : > { %v528_v43 = vadd.f32 %v527_v40, %v526_v36  ;;  %v629_v44 = vadd.f32 %v628_v38, %v627_v34  ;;  %v865_v45 = vpop.f32.mrf.mxu0  ;;  %v599_v34 = vmul.f32 %v1178_v24, %v1178_v24  ;;  %v478_v38 = vpop.f32.mrf.mxu1  ;;  %v648_v39 = vsel %vm507_vm2, %v598_v30, 0.0 }
  0xf7   : > { %v630_v48 = vsel %vm507_vm2, %v589_v41, 0.0  ;;  %v592_v55 = vmul.f32 %v865_v45, %v865_v45  ;;  %v533_v61 = vsel %vm507_vm2, %v865_v45, 0.0  ;;  %v600_v40 = vmul.f32 %v1172_v11, %v1172_v11 }
  0xf8   : > { %v631_v49 = vadd.f32 %v630_v48, %v629_v44  ;;  %v408_v50 = vpop.f32.mrf.mxu0  ;;  %v530_v51 = vadd.f32 %v529_v47, %v528_v43  ;;  %v547_v62 = vsel %vm507_vm2, %v1178_v24, 0.0  ;;  %v549_v53 = vsel %vm507_vm2, %v1172_v11, 0.0 }
  0xf9   : > { %v531_v56 = vsel %vm507_vm2, %v408_v50, 0.0  ;;  %v591_v57 = vmul.f32 %v408_v50, %v408_v50  ;;  %v636_v4 = vsel %vm507_vm2, %v592_v55, 0.0  ;;  %v650_v44 = vsel %vm507_vm2, %v599_v34, 0.0 }
  0xfa   : > { %v532_v58 = vadd.f32 %v531_v56, %v530_v51  ;;  %v633_v59 = vadd.f32 %v632_v54, %v631_v49  ;;  %v868_v60 = vpop.f32.mrf.mxu0  ;;  %v601_v45 = vmul.f32 %v458_v52, %v458_v52  ;;  %v889_v49 = vpop.f32.mrf.mxu1  ;;  %v652_v50 = vsel %vm507_vm2, %v600_v40, 0.0 }
  0xfb   : > { %v634_v63 = vsel %vm507_vm2, %v591_v57, 0.0  ;;  %v594_v5 = vmul.f32 %v868_v60, %v868_v60  ;;  %v537_v10 = vsel %vm507_vm2, %v868_v60, 0.0  ;;  %v602_v51 = vmul.f32 %v1184_v37, %v1184_v37 }
  0xfc   : > { %v635_v0 = vadd.f32 %v634_v63, %v633_v59  ;;  %v418_v1 = vpop.f32.mrf.mxu0  ;;  %v534_v2 = vadd.f32 %v533_v61, %v532_v58  ;;  %v551_v54 = vsel %vm507_vm2, %v458_v52, 0.0  ;;  %v553_v56 = vsel %vm507_vm2, %v1184_v37, 0.0  ;;  %v488_v60 = vpop.f32.mrf.mxu1 }
  0xfd   : > { %v535_v6 = vsel %vm507_vm2, %v418_v1, 0.0  ;;  %v593_v7 = vmul.f32 %v418_v1, %v418_v1  ;;  %v640_v17 = vsel %vm507_vm2, %v594_v5, 0.0  ;;  %v654_v11 = vsel %vm507_vm2, %v601_v45, 0.0 }
  0xfe   : > { %v536_v8 = vadd.f32 %v535_v6, %v534_v2  ;;  %v637_v9 = vadd.f32 %v636_v4, %v635_v0  ;;  %v603_v57 = vmul.f32 %v468_v16, %v468_v16  ;;  %v656_v61 = vsel %vm507_vm2, %v602_v51, 0.0 }
  0xff   : > { %v638_v12 = vsel %vm507_vm2, %v593_v7, 0.0  ;;  %v604_v63 = vmul.f32 %v883_v3, %v883_v3  ;;  %v555_v0 = vsel %vm507_vm2, %v468_v16, 0.0  ;;  %v557_v52 = vsel %vm507_vm2, %v883_v3, 0.0  ;;  %v892_v7 = vpop.f32.mrf.mxu1 }
 0x100   : > { %v538_v14 = vadd.f32 %v537_v10, %v536_v8  ;;  %v639_v15 = vadd.f32 %v638_v12, %v637_v9  ;;  %v658_v4 = vsel %vm507_vm2, %v603_v57, 0.0  ;;  %v605_v5 = vmul.f32 %v478_v38, %v478_v38 }
 0x101   : > { %v660_v8 = vsel %vm507_vm2, %v604_v63, 0.0  ;;  %v606_v9 = vmul.f32 %v886_v28, %v886_v28  ;;  %v559_v10 = vsel %vm507_vm2, %v478_v38, 0.0  ;;  %v607_v16 = vmul.f32 %v488_v60, %v488_v60  ;;  %v498_v18 = vpop.f32.mrf.mxu1 }
 0x102   : > { %v641_v20 = vadd.f32 %v640_v17, %v639_v15  ;;  %v540_v21 = vadd.f32 %v539_v19, %v538_v14  ;;  %v561_v14 = vsel %vm507_vm2, %v886_v28, 0.0  ;;  %v662_v15 = vsel %vm507_vm2, %v605_v5, 0.0 }
 0x103   : > { %v664_v19 = vsel %vm507_vm2, %v606_v9, 0.0  ;;  %v565_v25 = vsel %vm507_vm2, %v889_v49, 0.0 }
 0x104   : > { %v643_v26 = vadd.f32 %v642_v23, %v641_v20  ;;  %v542_v27 = vadd.f32 %v541_v22, %v540_v21  ;;  %v608_v20 = vmul.f32 %v889_v49, %v889_v49  ;;  %v563_v21 = vsel %vm507_vm2, %v488_v60, 0.0 }
 0x106   : > { %v544_v31 = vadd.f32 %v543_v46, %v542_v27  ;;  %v645_v32 = vadd.f32 %v644_v29, %v643_v26  ;;  %v666_v26 = vsel %vm507_vm2, %v607_v16, 0.0  ;;  %v609_v27 = vmul.f32 %v498_v18, %v498_v18 }
 0x107   : > { %v668_v30 = vsel %vm507_vm2, %v608_v20, 0.0  ;;  %v610_v46 = vmul.f32 %v892_v7, %v892_v7 }
 0x108   : > { %v647_v35 = vadd.f32 %v646_v33, %v645_v32  ;;  %v546_v36 = vadd.f32 %v545_v42, %v544_v31  ;;  %v567_v31 = vsel %vm507_vm2, %v498_v18, 0.0  ;;  %v569_v33 = vsel %vm507_vm2, %v892_v7, 0.0 }
 0x109   : > { %v670_v34 = vsel %vm507_vm2, %v609_v27, 0.0  ;;  %v672_v38 = vsel %vm507_vm2, %v610_v46, 0.0 }
 0x10a   : > { %v548_v41 = vadd.f32 %v547_v62, %v546_v36  ;;  %v649_v43 = vadd.f32 %v648_v39, %v647_v35 }
 0x10c   : > { %v651_v47 = vadd.f32 %v650_v44, %v649_v43  ;;  %v550_v48 = vadd.f32 %v549_v53, %v548_v41 }
 0x10e   : > { %v552_v55 = vadd.f32 %v551_v54, %v550_v48  ;;  %v653_v24 = vadd.f32 %v652_v50, %v651_v47 }
 0x110   : > { %v655_v58 = vadd.f32 %v654_v11, %v653_v24  ;;  %v554_v59 = vadd.f32 %v553_v56, %v552_v55 }
 0x112   : > { %v556_v1 = vadd.f32 %v555_v0, %v554_v59  ;;  %v657_v2 = vadd.f32 %v656_v61, %v655_v58 }
 0x114   : > { %v659_v6 = vadd.f32 %v658_v4, %v657_v2  ;;  %v558_v37 = vadd.f32 %v557_v52, %v556_v1 }
 0x116   : > { %v560_v12 = vadd.f32 %v559_v10, %v558_v37  ;;  %v661_v13 = vadd.f32 %v660_v8, %v659_v6 }
 0x118   : > { %v663_v17 = vadd.f32 %v662_v15, %v661_v13  ;;  %v562_v3 = vadd.f32 %v561_v14, %v560_v12 }
 0x11a   : > { %v564_v22 = vadd.f32 %v563_v21, %v562_v3  ;;  %v665_v23 = vadd.f32 %v664_v19, %v663_v17 }
 0x11c   : > { %v667_v28 = vadd.f32 %v666_v26, %v665_v23  ;;  %v566_v29 = vadd.f32 %v565_v25, %v564_v22 }
 0x11e   : > { %v568_v32 = vadd.f32 %v567_v31, %v566_v29  ;;  %v669_v42 = vadd.f32 %v668_v30, %v667_v28 }
 0x120   : > { %v570_v35 = vadd.f32 %v569_v33, %v568_v32  ;;  %v671_v36 = vadd.f32 %v670_v34, %v669_v42 }
 0x122   : > { %v571_v39 = vrot.slane %v570_v35, 4  ;;  %v673_v40 = vadd.f32 %v672_v38, %v671_v36 }
 0x124   : > { %v572_v62 = vadd.f32 %v571_v39, %v570_v35  ;;  %v674_v41 = vrot.slane %v673_v40, 4 }
 0x126   : > { %v573_v43 = vrot.slane %v572_v62, 2  ;;  %v675_v53 = vadd.f32 %v674_v41, %v673_v40 }
 0x128   : > { %v574_v44 = vadd.f32 %v573_v43, %v572_v62  ;;  %v676_v45 = vrot.slane %v675_v53, 2 }
 0x12a   : > { %v575_v47 = vrot.slane %v574_v44, 1  ;;  %v677_v48 = vadd.f32 %v676_v45, %v675_v53 }
 0x12c   : > { %v576_v49 = vadd.f32 %v575_v47, %v574_v44  ;;  %v678_v50 = vrot.slane %v677_v48, 1 }
 0x12e   : > { %578 = vst.msk [vmem:[%s137_s16] sm:$0x1] %vm577_vm3, %v576_v49  ;;  %v679_v51 = vadd.f32 %v678_v50, %v677_v48 }
 0x130   : > { %680 = vst.msk [vmem:[%s137_s16 + $0x1] sm:$0x1] %vm577_vm3, %v679_v51 }
 0x131   : > { %955 = shalt.err (!%p952_p3)
}
 0x132   : > { %s956_s30 = scalar_lea.hbm %s693_s23, 32  ;;  %s960_s4 = scalar_lea.hbm %s1288_s2, 64 }
 0x133   : > { %p957_p4 = scmp.ne.s32.totalorder %s693_s23, %s956_s30  ;;  %p961_p9 = scmp.lt.s32.totalorder %s693_s23, %s1288_s2 }
 0x134   : > { %p962_p10 = scmp.lt.s32.totalorder %s960_s4, %s956_s30 }
 0x135   : > { %p958_p7 = pnand %p957_p4, %p1055_p5 }
 0x136   : > { %p963_p11 = por %p962_p10, %p961_p9 }
 0x137   : > { %p959_p8 = pneg %p958_p7 }
 0x139   : > { %p964_p12 = pnand %p963_p11, %p959_p8 }
 0x13b   : > { %967 = shalt.err (!%p964_p12)
}
 0x13c   : > { %903 = dma.vmem_to_hbm [thread:$0]  (%p1055_p5), %s696_s17, 32, %s693_s23, %s682_s24  }
 0x13d PF: > { %p909_p13 = scmp.ge.s32.totalorder %s1002_s12, 2  ;;  %s707_s7 = sand.u32 1, %s990_s9  }
 0x13e   : > { %s708_s8 = scalar_lea.sflag [#allocation3], %s707_s7 }
 0x13f   : > { %p906_p0 = pnand %p909_p13, %p1059_p6 }
 0x141   : > { %p907_p1 = pneg %p906_p0 }
 0x143   : > { %985 = dma.done.wait (%p907_p1), %s708_s8, 32  }
 0x144   : > { %987 = vsyncadd (%p907_p1), %s708_s8, 4294967264  ;;  %p12_p2 = scmp.ge.s32.totalorder %s1043_s15, 4   ;;  %s1291_s9 = smov %s994_s10 }
 0x145   : > { %s1292_s10 = smov %s998_s11  ;;  %s1293_s11 = smov %s1053_s18 }
 0x146   : > { %s1294_s12 = smov %s1043_s15  ;;  %14 = sbr.rel (!%p12_p2) target bundleno = 3 (0x3), region = 63 }
 0x14b   :  { %713 = vsyncpa [#allocation3], 1 }
 0x14c   :  { %715 = vsyncpa [#allocation3 + $0x1], 1 }

</bundles_post_ra>
